<compile_context>
chip_gen: v5e
topology: v5e:2x2
jax: 0.10.0
libtpu: 0.0.40
codegen_flags: <defaults>
</compile_context>

<pallas_src>
import functools

import jax
import jax.numpy as jnp
from jax.experimental import pallas as pl
from jax.experimental.pallas import tpu as pltpu


def _adaptive_bounds(in_size: int, out_size: int):
    """Static per-output-cell window bounds, matching F.adaptive_max_pool2d."""
    starts = tuple((i * in_size) // out_size for i in range(out_size))
    ends = tuple(-(-((i + 1) * in_size) // out_size) for i in range(out_size))
    return starts, ends


def _round_up(x: int, m: int) -> int:
    return ((x + m - 1) // m) * m


def _adaptive_max_pool_kernel(x_ref, o_ref, *, hs, he, ws, we, w):
    # x_ref: (TILE_NC, H*W) lane-dense block ; o_ref: (TILE_NC, OH*OW).
    x = x_ref[...]
    cols = []
    for i in range(len(hs)):
        # H-window reduction: elementwise max of full-width W rows (VPU).
        acc = x[:, hs[i] * w:(hs[i] + 1) * w]
        for h in range(hs[i] + 1, he[i]):
            acc = jnp.maximum(acc, x[:, h * w:(h + 1) * w])
        # W-window reduction: small lane reductions, one per output column.
        for j in range(len(ws)):
            cols.append(jnp.max(acc[:, ws[j]:we[j]], axis=1, keepdims=True))
    # flatten(2) order: i major, j minor.
    o_ref[...] = jnp.concatenate(cols, axis=1)


def max_pool(x, pool_size, single: bool = False):
    """Equivalent of MaxPool.forward / MaxPool.forward_single."""
    if isinstance(pool_size, int):
        oh = ow = pool_size
    else:
        oh, ow = pool_size
    n, c, h, w = x.shape
    hs, he = _adaptive_bounds(h, oh)
    ws, we = _adaptive_bounds(w, ow)

    nc = n * c
    hw = h * w
    out_w = oh * ow
    itemsize = jnp.dtype(x.dtype).itemsize
    # Sublane multiple for the second-to-last block dim (f32:8, bf16:16, int8:32).
    sub = {4: 8, 2: 16, 1: 32}.get(itemsize, 8)

    # Tile the N*C axis so the double-buffered (in + out) working set stays
    # <= ~8 MiB: comfortably under v5e's 16 MiB and v6e/v7x's 32 MiB scoped
    # VMEM defaults, and leaves headroom on v7x's 64 MiB physical VMEM.
    vmem_budget = 8 * 1024 * 1024
    per_row_bytes = (hw + out_w) * itemsize
    cap = max(sub, ((vmem_budget // (2 * per_row_bytes)) // sub) * sub)
    tile = min(_round_up(nc, sub), cap, 1024)

    nc_pad = _round_up(nc, tile)
    xr = x.reshape(nc, hw)
    if nc_pad != nc:
        # Channels are independent: zero padding never mixes into real rows.
        xr = jnp.pad(xr, ((0, nc_pad - nc), (0, 0)))

    kernel = functools.partial(
        _adaptive_max_pool_kernel, hs=hs, he=he, ws=ws, we=we, w=w)

    y = pl.pallas_call(
        kernel,
        out_shape=jax.ShapeDtypeStruct((nc_pad, out_w), x.dtype),
        grid=(nc_pad // tile,),
        in_specs=[pl.BlockSpec((tile, hw), lambda i: (i, 0))],
        out_specs=pl.BlockSpec((tile, out_w), lambda i: (i, 0)),
        compiler_params=pltpu.CompilerParams(
            dimension_semantics=("parallel",)),
        cost_estimate=pl.CostEstimate(
            flops=nc * hw,
            transcendentals=0,
            bytes_accessed=nc * (hw + out_w) * itemsize),
    )(xr)

    y = y[:nc].reshape(n, c, out_w)
    if single:
        return y
    # forward(): pos_feature and ori_feature are the same pooled tensor.
    return y, y


def _ref_adaptive_max_pool(x, pool_size):
    """Pure-JAX reference matching F.adaptive_max_pool2d(x, pool_size).flatten(2)."""
    if isinstance(pool_size, int):
        oh = ow = pool_size
    else:
        oh, ow = pool_size
    n, c, h, w = x.shape
    hs, he = _adaptive_bounds(h, oh)
    ws, we = _adaptive_bounds(w, ow)
    rows = []
    for i in range(oh):
        cols = []
        for j in range(ow):
            cols.append(x[:, :, hs[i]:he[i], ws[j]:we[j]].max(axis=(2, 3)))
        rows.append(jnp.stack(cols, axis=-1))
    return jnp.stack(rows, axis=-2).reshape(n, c, oh * ow)


if __name__ == "__main__":
    key = jax.random.PRNGKey(0)

    # Case 1: divisible windows (the configuration the module is used with).
    x = jax.random.normal(key, (2, 4, 16, 16), dtype=jnp.float32)
    pool_size = 4  # adaptive_max_pool2d (4, 4) -> flatten(2) -> 16 features

    pos_feature, ori_feature = max_pool(x, pool_size, single=False)
    jax.block_until_ready(pos_feature)

    ref = _ref_adaptive_max_pool(x, pool_size)
    assert pos_feature.shape == (2, 4, 16)
    assert jnp.array_equal(pos_feature, ori_feature)
    assert jnp.allclose(pos_feature, ref)

    # forward_single path.
    single_out = max_pool(x, pool_size, single=True)
    jax.block_until_ready(single_out)
    assert jnp.allclose(single_out, ref)

    # Case 2: general adaptive (non-divisible) windows + N*C padding path.
    x2 = jax.random.normal(jax.random.PRNGKey(1), (2, 3, 10, 12),
                           dtype=jnp.float32)
    out2 = max_pool(x2, 4, single=True)
    jax.block_until_ready(out2)
    assert jnp.allclose(out2, _ref_adaptive_max_pool(x2, 4))

    print("KERNEL_OK")
</pallas_src>

<mosaic_0001>
module attributes {stable_mosaic.version = 11 : i64} {
  func.func @_adaptive_max_pool_kernel(%arg0: i32, %arg1: memref<8x256xf32, #tpu.memory_space<vmem>>, %arg2: memref<8x16xf32, #tpu.memory_space<vmem>>) attributes {dimension_semantics = [#tpu.dimension_semantics<parallel>], iteration_bounds = array<i64: 1>, scalar_prefetch = 0 : i64, scratch_operands = 0 : i64, tpu.core_type = #tpu.core_type<tc>, window_params = [{transform_indices = @transform_0, window_bounds = array<i64: 8, 256>}, {transform_indices = @transform_1, window_bounds = array<i64: 8, 16>}]} {
    %c0 = arith.constant 0 : index
    %c0_0 = arith.constant 0 : index
    %0 = vector.load %arg1[%c0, %c0_0] : memref<8x256xf32, #tpu.memory_space<vmem>>, vector<8x256xf32>
    %1 = vector.extract_strided_slice %0 {offsets = [0, 0], sizes = [8, 16], strides = [1, 1]} : vector<8x256xf32> to vector<8x16xf32>
    %2 = vector.extract_strided_slice %0 {offsets = [0, 16], sizes = [8, 16], strides = [1, 1]} : vector<8x256xf32> to vector<8x16xf32>
    %3 = arith.maximumf %1, %2 : vector<8x16xf32>
    %4 = vector.extract_strided_slice %0 {offsets = [0, 32], sizes = [8, 16], strides = [1, 1]} : vector<8x256xf32> to vector<8x16xf32>
    %5 = arith.maximumf %3, %4 : vector<8x16xf32>
    %6 = vector.extract_strided_slice %0 {offsets = [0, 48], sizes = [8, 16], strides = [1, 1]} : vector<8x256xf32> to vector<8x16xf32>
    %7 = arith.maximumf %5, %6 : vector<8x16xf32>
    %8 = vector.extract_strided_slice %7 {offsets = [0, 0], sizes = [8, 4], strides = [1, 1]} : vector<8x16xf32> to vector<8x4xf32>
    %cst = arith.constant dense<0xFF800000> : vector<8xf32>
    %9 = vector.multi_reduction <maximumf>, %8, %cst [1] : vector<8x4xf32> to vector<8xf32>
    %10 = vector.shape_cast %9 : vector<8xf32> to vector<8x1xf32>
    %11 = vector.extract_strided_slice %7 {offsets = [0, 4], sizes = [8, 4], strides = [1, 1]} : vector<8x16xf32> to vector<8x4xf32>
    %cst_1 = arith.constant dense<0xFF800000> : vector<8xf32>
    %12 = vector.multi_reduction <maximumf>, %11, %cst_1 [1] : vector<8x4xf32> to vector<8xf32>
    %13 = vector.shape_cast %12 : vector<8xf32> to vector<8x1xf32>
    %14 = vector.extract_strided_slice %7 {offsets = [0, 8], sizes = [8, 4], strides = [1, 1]} : vector<8x16xf32> to vector<8x4xf32>
    %cst_2 = arith.constant dense<0xFF800000> : vector<8xf32>
    %15 = vector.multi_reduction <maximumf>, %14, %cst_2 [1] : vector<8x4xf32> to vector<8xf32>
    %16 = vector.shape_cast %15 : vector<8xf32> to vector<8x1xf32>
    %17 = vector.extract_strided_slice %7 {offsets = [0, 12], sizes = [8, 4], strides = [1, 1]} : vector<8x16xf32> to vector<8x4xf32>
    %cst_3 = arith.constant dense<0xFF800000> : vector<8xf32>
    %18 = vector.multi_reduction <maximumf>, %17, %cst_3 [1] : vector<8x4xf32> to vector<8xf32>
    %19 = vector.shape_cast %18 : vector<8xf32> to vector<8x1xf32>
    %20 = vector.extract_strided_slice %0 {offsets = [0, 64], sizes = [8, 16], strides = [1, 1]} : vector<8x256xf32> to vector<8x16xf32>
    %21 = vector.extract_strided_slice %0 {offsets = [0, 80], sizes = [8, 16], strides = [1, 1]} : vector<8x256xf32> to vector<8x16xf32>
    %22 = arith.maximumf %20, %21 : vector<8x16xf32>
    %23 = vector.extract_strided_slice %0 {offsets = [0, 96], sizes = [8, 16], strides = [1, 1]} : vector<8x256xf32> to vector<8x16xf32>
    %24 = arith.maximumf %22, %23 : vector<8x16xf32>
    %25 = vector.extract_strided_slice %0 {offsets = [0, 112], sizes = [8, 16], strides = [1, 1]} : vector<8x256xf32> to vector<8x16xf32>
    %26 = arith.maximumf %24, %25 : vector<8x16xf32>
    %27 = vector.extract_strided_slice %26 {offsets = [0, 0], sizes = [8, 4], strides = [1, 1]} : vector<8x16xf32> to vector<8x4xf32>
    %cst_4 = arith.constant dense<0xFF800000> : vector<8xf32>
    %28 = vector.multi_reduction <maximumf>, %27, %cst_4 [1] : vector<8x4xf32> to vector<8xf32>
    %29 = vector.shape_cast %28 : vector<8xf32> to vector<8x1xf32>
    %30 = vector.extract_strided_slice %26 {offsets = [0, 4], sizes = [8, 4], strides = [1, 1]} : vector<8x16xf32> to vector<8x4xf32>
    %cst_5 = arith.constant dense<0xFF800000> : vector<8xf32>
    %31 = vector.multi_reduction <maximumf>, %30, %cst_5 [1] : vector<8x4xf32> to vector<8xf32>
    %32 = vector.shape_cast %31 : vector<8xf32> to vector<8x1xf32>
    %33 = vector.extract_strided_slice %26 {offsets = [0, 8], sizes = [8, 4], strides = [1, 1]} : vector<8x16xf32> to vector<8x4xf32>
    %cst_6 = arith.constant dense<0xFF800000> : vector<8xf32>
    %34 = vector.multi_reduction <maximumf>, %33, %cst_6 [1] : vector<8x4xf32> to vector<8xf32>
    %35 = vector.shape_cast %34 : vector<8xf32> to vector<8x1xf32>
    %36 = vector.extract_strided_slice %26 {offsets = [0, 12], sizes = [8, 4], strides = [1, 1]} : vector<8x16xf32> to vector<8x4xf32>
    %cst_7 = arith.constant dense<0xFF800000> : vector<8xf32>
    %37 = vector.multi_reduction <maximumf>, %36, %cst_7 [1] : vector<8x4xf32> to vector<8xf32>
    %38 = vector.shape_cast %37 : vector<8xf32> to vector<8x1xf32>
    %39 = vector.extract_strided_slice %0 {offsets = [0, 128], sizes = [8, 16], strides = [1, 1]} : vector<8x256xf32> to vector<8x16xf32>
    %40 = vector.extract_strided_slice %0 {offsets = [0, 144], sizes = [8, 16], strides = [1, 1]} : vector<8x256xf32> to vector<8x16xf32>
    %41 = arith.maximumf %39, %40 : vector<8x16xf32>
    %42 = vector.extract_strided_slice %0 {offsets = [0, 160], sizes = [8, 16], strides = [1, 1]} : vector<8x256xf32> to vector<8x16xf32>
    %43 = arith.maximumf %41, %42 : vector<8x16xf32>
    %44 = vector.extract_strided_slice %0 {offsets = [0, 176], sizes = [8, 16], strides = [1, 1]} : vector<8x256xf32> to vector<8x16xf32>
    %45 = arith.maximumf %43, %44 : vector<8x16xf32>
    %46 = vector.extract_strided_slice %45 {offsets = [0, 0], sizes = [8, 4], strides = [1, 1]} : vector<8x16xf32> to vector<8x4xf32>
    %cst_8 = arith.constant dense<0xFF800000> : vector<8xf32>
    %47 = vector.multi_reduction <maximumf>, %46, %cst_8 [1] : vector<8x4xf32> to vector<8xf32>
    %48 = vector.shape_cast %47 : vector<8xf32> to vector<8x1xf32>
    %49 = vector.extract_strided_slice %45 {offsets = [0, 4], sizes = [8, 4], strides = [1, 1]} : vector<8x16xf32> to vector<8x4xf32>
    %cst_9 = arith.constant dense<0xFF800000> : vector<8xf32>
    %50 = vector.multi_reduction <maximumf>, %49, %cst_9 [1] : vector<8x4xf32> to vector<8xf32>
    %51 = vector.shape_cast %50 : vector<8xf32> to vector<8x1xf32>
    %52 = vector.extract_strided_slice %45 {offsets = [0, 8], sizes = [8, 4], strides = [1, 1]} : vector<8x16xf32> to vector<8x4xf32>
    %cst_10 = arith.constant dense<0xFF800000> : vector<8xf32>
    %53 = vector.multi_reduction <maximumf>, %52, %cst_10 [1] : vector<8x4xf32> to vector<8xf32>
    %54 = vector.shape_cast %53 : vector<8xf32> to vector<8x1xf32>
    %55 = vector.extract_strided_slice %45 {offsets = [0, 12], sizes = [8, 4], strides = [1, 1]} : vector<8x16xf32> to vector<8x4xf32>
    %cst_11 = arith.constant dense<0xFF800000> : vector<8xf32>
    %56 = vector.multi_reduction <maximumf>, %55, %cst_11 [1] : vector<8x4xf32> to vector<8xf32>
    %57 = vector.shape_cast %56 : vector<8xf32> to vector<8x1xf32>
    %58 = vector.extract_strided_slice %0 {offsets = [0, 192], sizes = [8, 16], strides = [1, 1]} : vector<8x256xf32> to vector<8x16xf32>
    %59 = vector.extract_strided_slice %0 {offsets = [0, 208], sizes = [8, 16], strides = [1, 1]} : vector<8x256xf32> to vector<8x16xf32>
    %60 = arith.maximumf %58, %59 : vector<8x16xf32>
    %61 = vector.extract_strided_slice %0 {offsets = [0, 224], sizes = [8, 16], strides = [1, 1]} : vector<8x256xf32> to vector<8x16xf32>
    %62 = arith.maximumf %60, %61 : vector<8x16xf32>
    %63 = vector.extract_strided_slice %0 {offsets = [0, 240], sizes = [8, 16], strides = [1, 1]} : vector<8x256xf32> to vector<8x16xf32>
    %64 = arith.maximumf %62, %63 : vector<8x16xf32>
    %65 = vector.extract_strided_slice %64 {offsets = [0, 0], sizes = [8, 4], strides = [1, 1]} : vector<8x16xf32> to vector<8x4xf32>
    %cst_12 = arith.constant dense<0xFF800000> : vector<8xf32>
    %66 = vector.multi_reduction <maximumf>, %65, %cst_12 [1] : vector<8x4xf32> to vector<8xf32>
    %67 = vector.shape_cast %66 : vector<8xf32> to vector<8x1xf32>
    %68 = vector.extract_strided_slice %64 {offsets = [0, 4], sizes = [8, 4], strides = [1, 1]} : vector<8x16xf32> to vector<8x4xf32>
    %cst_13 = arith.constant dense<0xFF800000> : vector<8xf32>
    %69 = vector.multi_reduction <maximumf>, %68, %cst_13 [1] : vector<8x4xf32> to vector<8xf32>
    %70 = vector.shape_cast %69 : vector<8xf32> to vector<8x1xf32>
    %71 = vector.extract_strided_slice %64 {offsets = [0, 8], sizes = [8, 4], strides = [1, 1]} : vector<8x16xf32> to vector<8x4xf32>
    %cst_14 = arith.constant dense<0xFF800000> : vector<8xf32>
    %72 = vector.multi_reduction <maximumf>, %71, %cst_14 [1] : vector<8x4xf32> to vector<8xf32>
    %73 = vector.shape_cast %72 : vector<8xf32> to vector<8x1xf32>
    %74 = vector.extract_strided_slice %64 {offsets = [0, 12], sizes = [8, 4], strides = [1, 1]} : vector<8x16xf32> to vector<8x4xf32>
    %cst_15 = arith.constant dense<0xFF800000> : vector<8xf32>
    %75 = vector.multi_reduction <maximumf>, %74, %cst_15 [1] : vector<8x4xf32> to vector<8xf32>
    %76 = vector.shape_cast %75 : vector<8xf32> to vector<8x1xf32>
    %77 = tpu.concatenate %10, %13, %16, %19, %29, %32, %35, %38, %48, %51, %54, %57, %67, %70, %73, %76 in 1 : vector<8x1xf32>, vector<8x1xf32>, vector<8x1xf32>, vector<8x1xf32>, vector<8x1xf32>, vector<8x1xf32>, vector<8x1xf32>, vector<8x1xf32>, vector<8x1xf32>, vector<8x1xf32>, vector<8x1xf32>, vector<8x1xf32>, vector<8x1xf32>, vector<8x1xf32>, vector<8x1xf32>, vector<8x1xf32> -> vector<8x16xf32>
    %c0_16 = arith.constant 0 : index
    %c0_17 = arith.constant 0 : index
    %78 = vector.load %arg2[%c0_16, %c0_17] : memref<8x16xf32, #tpu.memory_space<vmem>>, vector<8x16xf32>
    tpu.vector_store %arg2[%c0_16, %c0_17], %77 {strides = array<i32>} : memref<8x16xf32, #tpu.memory_space<vmem>>, vector<8x16xf32>,
    return
  }
  func.func @transform_0(%arg0: i32) -> (i32, i32) {
    %c0_i32 = arith.constant 0 : i32
    %c0_i32_0 = arith.constant 0 : i32
    return %arg0, %c0_i32 : i32, i32
  }
  func.func @transform_1(%arg0: i32) -> (i32, i32) {
    %c0_i32 = arith.constant 0 : i32
    %c0_i32_0 = arith.constant 0 : i32
    return %arg0, %c0_i32 : i32, i32
  }
}

</mosaic_0001>

<bundles_post_ra>
// kernel: tpu_custom_call.1
= control target key start
LH: loop header
LB: loop body
LE: loop exit
PB: predicated region body
PF: predicated region fallthrough
CT: control target
= control target key end

     0   :  { %6 = vsyncpa [#allocation3], 0  ;;  %s248_s0 = inlined_call_operand.hbm [shape: f32[8,256], index: 0, kind: input, shape index: {}]   ;;  %s249_s1 = inlined_call_operand.hbm [shape: f32[8,16], index: 1, kind: output, shape index: {}]  }
   0x1   :  { %7 = vsyncpa [#allocation4], 0  ;;  %s13_s8 = sshll.u32 %s248_s0, 4  ;;  %s212_s9 = smov [#allocation2]   ;;  %s14_s8 = int_to_ptr.hbm [resolvable:$true] %s13_s8 }
   0x2   :  { %s15_s10 = sshll.u32 %s212_s9, 4  ;;  %s16_s10 = int_to_ptr.vmem [resolvable:$true] %s15_s10 }
   0x3   :  { %18 = dma.hbm_to_vmem [thread:$0]  %s14_s8, 256, %s16_s10, [#allocation3]  }
   0x4   :  { %208 = dma.done.wait [#allocation3], 256  }
   0x5   :  { %209 = vsyncadd [#allocation3], 4294967040  ;;  %v23_v0 = vld [vmem:[#allocation2] sm:$0xff]  ;;  %s213_s11 = smov 112   ;;  %s214_s12 = smov 80   ;;  %v24_v1 = vld [vmem:[#allocation2 + $0x8] sm:$0xff] }
   0x6   :  { %26 = vrot.lane.b32.xlu0 %v23_v0, %s213_s11  ;;  %34 = vrot.lane.b32.xlu1 %v23_v0, %s214_s12  ;;  %s215_s13 = smov 96   ;;  %vm46_vm0 = vcmask 97344   ;;  %vm42_vm1 = vcmask 64544   ;;  %vm38_vm2 = vcmask 31744   ;;  %vm50_vm3 = vcmask 130144   ;;  %s216_s0 = smov [#allocation5]  }
   0x7   :  { %75 = vrot.lane.b32.xlu2 %v24_v1, %s215_s13  ;;  %vm58_vm4 = vcmask 589344   ;;  %vm54_vm5 = vcmask 556544   ;;  %vm62_vm6 = vcmask 622144   ;;  %vm66_vm7 = vcmask 654944   ;;  %s143_s14 = sshll.u32 %s216_s0, 4  ;;  %s145_s17 = sshll.u32 %s249_s1, 4  ;;  %s144_s14 = int_to_ptr.vmem [resolvable:$true] %s143_s14  ;;  %s146_s17 = int_to_ptr.hbm [resolvable:$true] %s145_s17 }
   0x8   :  { %vm107_vm8 = vcmask 7168   ;;  %vm109_vm9 = vcmask 15360   ;;  %vm111_vm10 = vcmask 23552   ;;  %vm114_vm11 = vcmask 39936  }
   0x9   :  { %vm116_vm12 = vcmask 48128   ;;  %vm118_vm13 = vcmask 56320   ;;  %vm120_vm14 = vcmask 64512   ;;  %vm122_vm15 = vcmask 72704  }
   0xe   :  { %30 = vrot.lane.b32.xlu0 %v23_v0, %s215_s13  ;;  %71 = vrot.lane.b32.xlu1 %v24_v1, %s213_s11 }
   0xf   :  { %79 = vrot.lane.b32.xlu2 %v24_v1, %s214_s12 }
  0x61   :  { %v76_v7 = vpop.permute.xlu2 %75 }
  0x69   :  { %v80_v15 = vpop.permute.xlu2 %79 }
  0x78   :  { %v27_v2 = vpop.permute.xlu0 %26  ;;  %v35_v3 = vpop.permute.xlu1 %34 }
  0x79   :  { %v29_v4 = vmax.f32 %v23_v0, %v27_v2 }
  0x80   :  { %v31_v5 = vpop.permute.xlu0 %30  ;;  %v72_v9 = vpop.permute.xlu1 %71 }
  0x81   :  { %v33_v6 = vmax.f32 %v29_v4, %v31_v5  ;;  %v74_v13 = vmax.f32 %v24_v1, %v72_v9 }
  0x83   :  { %v37_v8 = vmax.f32 %v33_v6, %v35_v3  ;;  %v78_v14 = vmax.f32 %v74_v13, %v76_v7 }
  0x85   :  { %v47_v10 = vsel %vm46_vm0, %v37_v8, -inf  ;;  %v43_v11 = vsel %vm42_vm1, %v37_v8, -inf  ;;  %v39_v12 = vsel %vm38_vm2, %v37_v8, -inf  ;;  %v51_v16 = vsel %vm50_vm3, %v37_v8, -inf }
  0x86   :  { %48 = vmax.xlane.f32.xlu2 %v47_v10  ;;  %44 = vmax.xlane.f32.xlu1 %v43_v11  ;;  %v59_v17 = vsel %vm58_vm4, %v37_v8, -inf  ;;  %v55_v18 = vsel %vm54_vm5, %v37_v8, -inf  ;;  %v82_v19 = vmax.f32 %v78_v14, %v80_v15  ;;  %v63_v21 = vsel %vm62_vm6, %v37_v8, -inf }
  0x87   :  { %40 = vmax.xlane.f32.xlu0 %v39_v12  ;;  %v67_v22 = vsel %vm66_vm7, %v37_v8, -inf }
  0x88   :  { %v83_v20 = vsel %vm38_vm2, %v82_v19, -inf  ;;  %v86_v23 = vsel %vm42_vm1, %v82_v19, -inf  ;;  %v92_v24 = vsel %vm50_vm3, %v82_v19, -inf  ;;  %v89_v25 = vsel %vm46_vm0, %v82_v19, -inf }
  0x89   :  { %v95_v26 = vsel %vm54_vm5, %v82_v19, -inf  ;;  %v101_v27 = vsel %vm62_vm6, %v82_v19, -inf  ;;  %v98_v28 = vsel %vm58_vm4, %v82_v19, -inf  ;;  %v104_v29 = vsel %vm66_vm7, %v82_v19, -inf }
  0x8a   :  { %vm124_vm0 = vcmask 80896   ;;  %vm126_vm1 = vcmask 89088   ;;  %vm130_vm3 = vcmask 105472   ;;  %vm132_vm4 = vcmask 113664  }
  0x8b   :  { %vm134_vm5 = vcmask 121856   ;;  %vm136_vm6 = vcmask 130048  }
  0x8e   :  { %52 = vmax.xlane.f32.xlu2 %v51_v16  ;;  %60 = vmax.xlane.f32.xlu1 %v59_v17 }
  0x8f   :  { %56 = vmax.xlane.f32.xlu0 %v55_v18 }
  0x96   :  { %64 = vmax.xlane.f32.xlu2 %v63_v21  ;;  %84 = vmax.xlane.f32.xlu1 %v83_v20 }
  0x97   :  { %68 = vmax.xlane.f32.xlu0 %v67_v22 }
  0x9e   :  { %87 = vmax.xlane.f32.xlu2 %v86_v23  ;;  %93 = vmax.xlane.f32.xlu1 %v92_v24 }
  0x9f   :  { %90 = vmax.xlane.f32.xlu0 %v89_v25 }
  0xa6   :  { %96 = vmax.xlane.f32.xlu2 %v95_v26  ;;  %102 = vmax.xlane.f32.xlu1 %v101_v27 }
  0xa7   :  { %99 = vmax.xlane.f32.xlu0 %v98_v28 }
  0xae   :  { %105 = vmax.xlane.f32.xlu2 %v104_v29 }
  0xf9   :  { %v49_v30 = vpop.xlane.xlu2 %48  ;;  %v45_v31 = vpop.xlane.xlu1 %44 }
  0xfa   :  { %v41_v32 = vpop.xlane.xlu0 %40 }
  0xfb   :  { %v108_v34 = vsel %vm107_vm8, %v41_v32, %v45_v31 }
  0xfc   :  { %v110_v37 = vsel %vm109_vm9, %v108_v34, %v49_v30 }
 0x101   :  { %v53_v33 = vpop.xlane.xlu2 %52  ;;  %v61_v35 = vpop.xlane.xlu1 %60 }
 0x102   :  { %v57_v36 = vpop.xlane.xlu0 %56  ;;  %v112_v38 = vsel %vm111_vm10, %v110_v37, %v53_v33 }
 0x103   :  { %v113_v39 = vsel %vm38_vm2, %v112_v38, %v57_v36  ;;  %vm128_vm2 = vcmask 97280  }
 0x104   :  { %v115_v42 = vsel %vm114_vm11, %v113_v39, %v61_v35 }
 0x109   :  { %v65_v40 = vpop.xlane.xlu2 %64  ;;  %v85_v43 = vpop.xlane.xlu1 %84 }
 0x10a   :  { %v69_v41 = vpop.xlane.xlu0 %68  ;;  %v117_v44 = vsel %vm116_vm12, %v115_v42, %v65_v40 }
 0x10b   :  { %v119_v45 = vsel %vm118_vm13, %v117_v44, %v69_v41 }
 0x10c   :  { %v121_v48 = vsel %vm120_vm14, %v119_v45, %v85_v43 }
 0x111   :  { %v88_v46 = vpop.xlane.xlu2 %87  ;;  %v94_v50 = vpop.xlane.xlu1 %93 }
 0x112   :  { %v91_v47 = vpop.xlane.xlu0 %90  ;;  %v123_v49 = vsel %vm122_vm15, %v121_v48, %v88_v46 }
 0x113   :  { %v125_v51 = vsel %vm124_vm0, %v123_v49, %v91_v47 }
 0x114   :  { %v127_v53 = vsel %vm126_vm1, %v125_v51, %v94_v50 }
 0x119   :  { %v97_v52 = vpop.xlane.xlu2 %96  ;;  %v103_v57 = vpop.xlane.xlu1 %102 }
 0x11a   :  { %v129_v54 = vsel %vm128_vm2, %v127_v53, %v97_v52  ;;  %v100_v55 = vpop.xlane.xlu0 %99 }
 0x11b   :  { %v131_v56 = vsel %vm130_vm3, %v129_v54, %v100_v55 }
 0x11c   :  { %v133_v59 = vsel %vm132_vm4, %v131_v56, %v103_v57 }
 0x121   :  { %v106_v58 = vpop.xlane.xlu2 %105 }
 0x122   :  { %v135_v60 = vsel %vm134_vm5, %v133_v59, %v106_v58 }
 0x123   :  { %137 = vst.msk [vmem:[#allocation5] sm:$0xff] %vm136_vm6, %v135_v60 }
 0x124   :  { %148 = dma.vmem_to_hbm [thread:$0]  %s144_s14, 128, %s146_s17, [#allocation4]  }
 0x125   :  { %210 = dma.done.wait [#allocation4], 128  }
 0x126   :  { %211 = vsyncadd [#allocation4], 4294967168 }
 0x127   :  { %153 = vsyncpa [#allocation3], 1 }
 0x128   :  { %154 = vsyncpa [#allocation4], 1 }

</bundles_post_ra>
